<compile_context>
chip_gen: v7x
topology: tpu7x:2x2x1
jax: 0.10.0
libtpu: 0.0.40
codegen_flags: <defaults>
</compile_context>

<pallas_src>
import functools

import jax
import jax.numpy as jnp
from jax import lax
from jax.experimental import pallas as pl
from jax.experimental.pallas import tpu as pltpu


def _round_up(x, m):
    return (x + m - 1) // m * m


def _pick_batch_tile(n, per_image_bytes, fixed_bytes, budget, rows_per_image,
                     mxu_min_rows=256):
    """Largest divisor of n whose (generously accounted) VMEM footprint fits
    `budget`.  If that leaves a single grid step, split the batch (for v7x's
    second TensorCore) only when the smaller block still feeds the MXU with
    >= mxu_min_rows matmul rows; on v5e/v6e splitting buys nothing."""
    divisors = [d for d in range(1, n + 1) if n % d == 0]
    fitting = [d for d in divisors if fixed_bytes + d * per_image_bytes <= budget]
    if not fitting:
        fitting = [1]
    best = fitting[-1]                      # biggest block that fits
    if n // best < 2:
        multi = [d for d in fitting if n // d >= 2]
        if multi and multi[-1] * rows_per_image >= mxu_min_rows:
            best = multi[-1]
    return best


def _shortcut_kernel(x_ref, src_ref, o_ref, *, pad):
    # x_ref:   (B, C, H*W)        flattened input planes (lane-dense)
    # src_ref: (1, Ho*Wo) int32   flat source index of every output pixel
    # o_ref:   (B, C_out, Ho*Wo)  with C_out = pad + C + pad
    b, c, hw = x_ref.shape
    howo = src_ref.shape[-1]

    # One-hot stride-2 selection matrix, built on-chip (VPU iota + compare;
    # overlaps with the MXU/DMA slots, so effectively free).
    p = lax.broadcasted_iota(jnp.int32, (hw, howo), 0)
    sel = (p == src_ref[...]).astype(x_ref.dtype)

    # Stride-2 spatial downsample of every (b, c) plane as one MXU matmul
    # (exact: each output picks up exactly one input element times 1.0).
    # Note: v7x MXU has no integer path — inputs are expected to be float.
    y = jnp.dot(x_ref[...].reshape(b * c, hw), sel,
                preferred_element_type=jnp.float32)
    y = y.reshape(b, c, howo).astype(o_ref.dtype)

    # Channel zero padding: three disjoint, write-once slab stores (no
    # zero-fill-then-overwrite double write).
    if pad > 0:
        zeros = jnp.zeros((b, pad, howo), o_ref.dtype)
        o_ref[:, :pad, :] = zeros
        o_ref[:, pad + c:, :] = zeros
    o_ref[:, pad:pad + c, :] = y


def lambda_layer(x, planes=None):
    """Pallas equivalent of the ResNet option-A shortcut LambdaLayer.

    x: NCHW array.  Returns NCHW array of shape
    (N, C + 2*(planes//4), ceil(H/2), ceil(W/2)).
    """
    n, c, h, w = x.shape
    if planes is None:
        planes = 2 * c                       # canonical usage: channel doubling
    pad = planes // 4
    c_out = c + 2 * pad

    # `::2` keeps ceil(dim/2) elements; no host-side padding needed for odd
    # H/W because all selected indices are already in range.
    ho, wo = (h + 1) // 2, (w + 1) // 2
    hw, howo = h * w, ho * wo

    # Free metadata reshape: NCHW -> (N, C, H*W) flat, lane-dense planes.
    x_flat = x.reshape(n, c, hw)

    # Flat source index of every output pixel (host-side index math; only
    # Ho*Wo*4 bytes ever reach HBM — the quadratic one-hot never does).
    q = jnp.arange(howo, dtype=jnp.int32)
    src = (2 * (q // wo) * w + 2 * (q % wo)).reshape(1, howo)

    # VMEM accounting, layout-padded to (8, 128) tiles: double-buffered
    # in/out blocks + the kernel's temporaries (loaded x value, f32 matmul
    # result, on-chip sel + iota).
    isz = jnp.dtype(x.dtype).itemsize
    in_img = _round_up(c, 8) * _round_up(hw, 128) * isz
    out_img = _round_up(c_out, 8) * _round_up(howo, 128) * isz
    acc_img = c * _round_up(howo, 128) * 4
    per_image = 3 * in_img + 2 * out_img + acc_img
    sel_bytes = _round_up(hw, 8) * _round_up(howo, 128) * max(isz, 4)
    fixed = 2 * sel_bytes                     # sel + iota temporaries
    budget = 20 * 1024 * 1024                 # of the 32 MiB scoped VMEM below
    vmem_limit = 32 * 1024 * 1024             # safe on v5e/v6e/v7x

    b_tile = _pick_batch_tile(n, per_image, fixed, budget, rows_per_image=c)
    grid = (n // b_tile,)

    cost = pl.CostEstimate(
        flops=int(2 * n * c * hw * howo),
        transcendentals=0,
        bytes_accessed=int(n * c * hw * isz + howo * 4 + n * c_out * howo * isz),
    )

    kernel = functools.partial(_shortcut_kernel, pad=pad)
    out_flat = pl.pallas_call(
        kernel,
        out_shape=jax.ShapeDtypeStruct((n, c_out, howo), x.dtype),
        grid=grid,
        in_specs=[
            pl.BlockSpec((b_tile, c, hw), lambda i: (i, 0, 0)),
            pl.BlockSpec((1, howo), lambda i: (0, 0)),   # tiny constant block
        ],
        out_specs=pl.BlockSpec((b_tile, c_out, howo), lambda i: (i, 0, 0)),
        compiler_params=pltpu.CompilerParams(
            dimension_semantics=("parallel",),
            vmem_limit_bytes=vmem_limit),
        cost_estimate=cost,
    )(x_flat, src)

    return out_flat.reshape(n, c_out, ho, wo)   # free metadata reshape back


def _reference(x, planes):
    pad = planes // 4
    y = x[:, :, ::2, ::2]
    return jnp.pad(y, ((0, 0), (pad, pad), (0, 0), (0, 0)))


if __name__ == "__main__":
    key = jax.random.PRNGKey(0)
    k_even, k_odd = jax.random.split(key)

    # Canonical CIFAR-ResNet option-A shortcut shape (NCHW), small.
    N, C, H, W = 2, 16, 16, 16
    x = jax.random.normal(k_even, (N, C, H, W), dtype=jnp.float32)
    planes = 2 * C                  # option-A shortcut doubles the channels
    out = jax.block_until_ready(lambda_layer(x, planes=planes))
    ref = _reference(x, planes)
    assert out.shape == ref.shape, (out.shape, ref.shape)
    assert jnp.allclose(out, ref), "mismatch vs reference (even spatial dims)"

    # Odd spatial dims exercise the new pad-free index path.
    x_odd = jax.random.normal(k_odd, (2, 16, 15, 15), dtype=jnp.float32)
    out_odd = jax.block_until_ready(lambda_layer(x_odd, planes=32))
    ref_odd = _reference(x_odd, 32)
    assert out_odd.shape == ref_odd.shape, (out_odd.shape, ref_odd.shape)
    assert jnp.allclose(out_odd, ref_odd), "mismatch vs reference (odd spatial dims)"

    print("KERNEL_OK")
</pallas_src>

<mosaic_0001>
module attributes {stable_mosaic.version = 11 : i64} {
  func.func @_shortcut_kernel(%arg0: i32, %arg1: memref<2x16x256xf32, #tpu.memory_space<vmem>>, %arg2: memref<1x64xi32, #tpu.memory_space<vmem>>, %arg3: memref<2x32x64xf32, #tpu.memory_space<vmem>>) attributes {dimension_semantics = [#tpu.dimension_semantics<parallel>], iteration_bounds = array<i64: 1>, scalar_prefetch = 0 : i64, scratch_operands = 0 : i64, tpu.core_type = #tpu.core_type<tc>, window_params = [{transform_indices = @transform_0, window_bounds = array<i64: 2, 16, 256>}, {pipeline_mode = #tpu.pipeline_mode<synchronous>, transform_indices = @transform_1, window_bounds = array<i64: 1, 64>}, {transform_indices = @transform_2, window_bounds = array<i64: 2, 32, 64>}]} {
    %0 = tpu.iota {dimensions = array<i32: 0>} : vector<256x64xi32>
    %c0 = arith.constant 0 : index
    %c0_0 = arith.constant 0 : index
    %1 = vector.load %arg2[%c0, %c0_0] : memref<1x64xi32, #tpu.memory_space<vmem>>, vector<1x64xi32>
    %2 = vector.broadcast %1 : vector<1x64xi32> to vector<256x64xi32>
    %3 = arith.cmpi eq, %0, %2 : vector<256x64xi32>
    %4 = arith.extui %3 : vector<256x64xi1> to vector<256x64xi32>
    %5 = arith.sitofp %4 : vector<256x64xi32> to vector<256x64xf32>
    %c0_1 = arith.constant 0 : index
    %c0_2 = arith.constant 0 : index
    %c0_3 = arith.constant 0 : index
    %6 = vector.load %arg1[%c0_1, %c0_2, %c0_3] : memref<2x16x256xf32, #tpu.memory_space<vmem>>, vector<2x16x256xf32>
    %7 = vector.shape_cast %6 : vector<2x16x256xf32> to vector<32x256xf32>
    %cst = arith.constant dense<0.000000e+00> : vector<32x64xf32>
    %8 = tpu.matmul %7, %5, %cst {dimension_numbers = #tpu.dot_dimension_numbers<[1], [0], [0], [1], [0, 0, 1, 1], [], []>} : vector<32x256xf32>, vector<256x64xf32>, vector<32x64xf32> -> vector<32x64xf32>
    %9 = vector.shape_cast %8 : vector<32x64xf32> to vector<2x16x64xf32>
    %cst_4 = arith.constant 0.000000e+00 : f32
    %10 = vector.broadcast %cst_4 : f32 to vector<2x8x64xf32>
    %c0_5 = arith.constant 0 : index
    %c0_6 = arith.constant 0 : index
    %c0_7 = arith.constant 0 : index
    %11 = vector.load %arg3[%c0_5, %c0_6, %c0_7] : memref<2x32x64xf32, #tpu.memory_space<vmem>>, vector<2x8x64xf32>
    tpu.vector_store %arg3[%c0_5, %c0_6, %c0_7], %10 {strides = array<i32>} : memref<2x32x64xf32, #tpu.memory_space<vmem>>, vector<2x8x64xf32>,
    %c0_8 = arith.constant 0 : index
    %c24 = arith.constant 24 : index
    %c0_9 = arith.constant 0 : index
    %12 = vector.load %arg3[%c0_8, %c24, %c0_9] : memref<2x32x64xf32, #tpu.memory_space<vmem>>, vector<2x8x64xf32>
    tpu.vector_store %arg3[%c0_8, %c24, %c0_9], %10 {strides = array<i32>} : memref<2x32x64xf32, #tpu.memory_space<vmem>>, vector<2x8x64xf32>,
    %c0_10 = arith.constant 0 : index
    %c8 = arith.constant 8 : index
    %c0_11 = arith.constant 0 : index
    %13 = vector.load %arg3[%c0_10, %c8, %c0_11] : memref<2x32x64xf32, #tpu.memory_space<vmem>>, vector<2x16x64xf32>
    tpu.vector_store %arg3[%c0_10, %c8, %c0_11], %9 {strides = array<i32>} : memref<2x32x64xf32, #tpu.memory_space<vmem>>, vector<2x16x64xf32>,
    return
  }
  func.func @transform_0(%arg0: i32) -> (i32, i32, i32) {
    %c0_i32 = arith.constant 0 : i32
    %c0_i32_0 = arith.constant 0 : i32
    %c0_i32_1 = arith.constant 0 : i32
    return %arg0, %c0_i32, %c0_i32_0 : i32, i32, i32
  }
  func.func @transform_1(%arg0: i32) -> (i32, i32) {
    %c0_i32 = arith.constant 0 : i32
    %c0_i32_0 = arith.constant 0 : i32
    %c0_i32_1 = arith.constant 0 : i32
    return %c0_i32, %c0_i32_0 : i32, i32
  }
  func.func @transform_2(%arg0: i32) -> (i32, i32, i32) {
    %c0_i32 = arith.constant 0 : i32
    %c0_i32_0 = arith.constant 0 : i32
    %c0_i32_1 = arith.constant 0 : i32
    return %arg0, %c0_i32, %c0_i32_0 : i32, i32, i32
  }
}

</mosaic_0001>

<bundles_post_ra>
// kernel: tpu_custom_call.1
= control target key start
LH: loop header
LB: loop body
LE: loop exit
PB: predicated region body
PF: predicated region fallthrough
CT: control target
= control target key end

     0   :  { %7 = vsyncpa [#allocation3], 0  ;;  %s658_s0 = inlined_call_operand.hbm [shape: f32[2,16,256], index: 0, kind: input, shape index: {}]   ;;  %s659_s1 = inlined_call_operand.vmem [shape: s32[1,64], index: 1, kind: input, shape index: {}]   ;;  %s660_s2 = inlined_call_operand.hbm [shape: f32[2,32,64], index: 2, kind: output, shape index: {}]  }
   0x1   :  { %8 = vsyncpa [#allocation4], 0  ;;  %s492_s9 = smov [#allocation2]   ;;  %s444_s13 = scalar_lea.hbm %s658_s0, 1024 }
   0x2   :  { %s14_s10 = sshll.u32 %s492_s9, 4  ;;  %p445_p0 = scmp.ne.s32.totalorder %s658_s0, %s444_s13  ;;  %s15_s10 = int_to_ptr.vmem [resolvable:$true] %s14_s10 }
   0x3   :  { %p448_p1 = scmp.lt.u32.totalorder %s444_s13, %s658_s0 }
   0x5   :  { %p450_p2 = pnand %p448_p1, %p445_p0 }
   0x7   :  { %453 = shalt.err (!%p450_p2)
}
   0x8   :  { %s454_s18 = scalar_lea.vmem %s15_s10, 1024  ;;  %p459_p4 = scmp.lt.s32.totalorder %s15_s10, %s15_s10 }
   0x9   :  { %p455_p3 = scmp.ne.s32.totalorder %s15_s10, %s454_s18  ;;  %p460_p5 = scmp.lt.s32.totalorder %s454_s18, %s454_s18 }
   0xb   :  { %p461_p6 = por %p460_p5, %p459_p4 }
   0xd   :  { %p462_p7 = pnand %p461_p6, %p455_p3 }
   0xf   :  { %465 = shalt.err (!%p462_p7)
}
  0x10   :  { %s493_s19 = smov 256   ;;  %s494_s20 = smov 16  }
  0x11   :  { %20 = dma.hbm_to_vmem [thread:$0]  %s658_s0, 1024, %s15_s10, [#allocation3], %s493_s19, %s493_s19, %s494_s20  }
  0x12   :  { %488 = dma.done.wait [#allocation3], 1024  }
  0x13   :  { %489 = vsyncadd [#allocation3], 4294966272  ;;  %v26_v0 = vlaneseq  ;;  %v541_v11 = vld [vmem:[%s659_s1] ss:$0 sm:$0xff]  ;;  %v161_v14 = vld [vmem:[#allocation2 + $0x8] sm:$0xff]  ;;  %v496_v43 = vmov 0.0  }
  0x14   :  { %232 = vmatprep.mubr.f32.mxu0 %v161_v14  ;;  %v495_v15 = vmov 1.0|1.0   ;;  %v165_v18 = vld [vmem:[#allocation2 + $0x28] sm:$0xff]  ;;  %v160_v37 = vld [vmem:[#allocation2] sm:$0xff]  ;;  %v163_v39 = vld [vmem:[#allocation2 + $0x18] sm:$0xff]  ;;  %s497_s1 = smov [#allocation5]  }
  0x15   :  { %v527_v1 = vshrl.u32 %v26_v0, 7  ;;  %242 = vmatprep.mubr.f32.mxu1 %v165_v18  ;;  %v164_v38 = vld [vmem:[#allocation2 + $0x20] sm:$0xff]  ;;  %v167_v40 = vld [vmem:[#allocation2 + $0x38] sm:$0xff]  ;;  %v162_v41 = vld [vmem:[#allocation2 + $0x10] sm:$0xff]  ;;  %s267_s24 = sshll.u32 %s497_s1, 4  ;;  %s268_s24 = int_to_ptr.vmem [resolvable:$true] %s267_s24 }
  0x16   :  { %v166_v42 = vld [vmem:[#allocation2 + $0x30] sm:$0xff]  ;;  %s466_s25 = scalar_lea.vmem %s268_s24, 1024  ;;  %p471_p9 = scmp.lt.s32.totalorder %s268_s24, %s268_s24 }
  0x17   :  { %v43_v2 = vadd.s32 128, %v527_v1  ;;  %v44_v3 = vadd.s32 136, %v527_v1  ;;  %v28_v4 = vadd.s32 8, %v527_v1  ;;  %v45_v5 = vadd.s32 144, %v527_v1  ;;  %p467_p8 = scmp.ne.s32.totalorder %s268_s24, %s466_s25  ;;  %p472_p10 = scmp.lt.s32.totalorder %s466_s25, %s466_s25 }
  0x18   :  { %v46_v6 = vadd.s32 152, %v527_v1  ;;  %v29_v7 = vadd.s32 16, %v527_v1  ;;  %v30_v8 = vadd.s32 24, %v527_v1  ;;  %v47_v9 = vadd.s32 160, %v527_v1 }
  0x19   :  { %v48_v10 = vadd.s32 168, %v527_v1  ;;  %v31_v12 = vadd.s32 32, %v527_v1  ;;  %v32_v13 = vadd.s32 40, %v527_v1  ;;  %vm80_vm0 = vcmp.eq.s32.totalorder %v43_v2, %v541_v11  ;;  %p473_p11 = por %p472_p10, %p471_p9 }
  0x1a   :  { %vm81_vm1 = vcmp.eq.s32.totalorder %v44_v3, %v541_v11  ;;  %vm64_vm2 = vcmp.eq.s32.totalorder %v527_v1, %v541_v11  ;;  %vm65_vm3 = vcmp.eq.s32.totalorder %v28_v4, %v541_v11  ;;  %vm82_vm5 = vcmp.eq.s32.totalorder %v45_v5, %v541_v11 }
  0x1b   :  { %vm388_vm4 = vmpackc.low %vm81_vm1, %vm80_vm0  ;;  %vm83_vm6 = vcmp.eq.s32.totalorder %v46_v6, %v541_v11  ;;  %vm66_vm7 = vcmp.eq.s32.totalorder %v29_v7, %v541_v11  ;;  %vm67_vm8 = vcmp.eq.s32.totalorder %v30_v8, %v541_v11  ;;  %vm84_vm10 = vcmp.eq.s32.totalorder %v47_v9, %v541_v11  ;;  %p474_p12 = pnand %p473_p11, %p467_p8 }
  0x1c   :  { %389 = vmatprep.subr.msk.bf16.mxu0 %vm388_vm4, %v495_v15  ;;  %420 = vmatprep.subr.msk.bf16.mxu1 %vm388_vm4, %v495_v15  ;;  %vm390_vm9 = vmpackc.low %vm65_vm3, %vm64_vm2  ;;  %vm85_vm11 = vcmp.eq.s32.totalorder %v48_v10, %v541_v11  ;;  %v49_v16 = vadd.s32 176, %v527_v1  ;;  %v50_v17 = vadd.s32 184, %v527_v1  ;;  %vm68_vm15 = vcmp.eq.s32.totalorder %v31_v12, %v541_v11 }
  0x1d   :  { %391 = vmatpush3.bf16.msk.msra.mxu0 %vm390_vm9, %v495_v15  ;;  %428 = vmatpush3.bf16.msk.msra.mxu1 %vm390_vm9, %v495_v15  ;;  %vm392_vm12 = vmpackc.low %vm83_vm6, %vm82_vm5  ;;  %vm69_vm0 = vcmp.eq.s32.totalorder %v32_v13, %v541_v11  ;;  %v33_v19 = vadd.s32 48, %v527_v1  ;;  %v34_v20 = vadd.s32 56, %v527_v1  ;;  %v51_v21 = vadd.s32 192, %v527_v1 }
  0x1e   :  { %393 = vmatprep.subr.msk.bf16.mxu0 %vm392_vm12, %v495_v15  ;;  %421 = vmatprep.subr.msk.bf16.mxu1 %vm392_vm12, %v495_v15  ;;  %vm394_vm13 = vmpackc.low %vm67_vm8, %vm66_vm7  ;;  %vm86_vm1 = vcmp.eq.s32.totalorder %v49_v16, %v541_v11  ;;  %vm87_vm2 = vcmp.eq.s32.totalorder %v50_v17, %v541_v11  ;;  %v52_v22 = vadd.s32 200, %v527_v1  ;;  %v35_v23 = vadd.s32 64, %v527_v1 }
  0x1f   :  { %vm396_vm14 = vmpackc.low %vm85_vm11, %vm84_vm10  ;;  %vm70_vm5 = vcmp.eq.s32.totalorder %v33_v19, %v541_v11  ;;  %vm71_vm6 = vcmp.eq.s32.totalorder %v34_v20, %v541_v11  ;;  %v36_v24 = vadd.s32 72, %v527_v1  ;;  %vm88_vm7 = vcmp.eq.s32.totalorder %v51_v21, %v541_v11 }
  0x20   :  { %vm398_vm3 = vmpackc.low %vm69_vm0, %vm68_vm15  ;;  %vm89_vm8 = vcmp.eq.s32.totalorder %v52_v22, %v541_v11  ;;  %v53_v25 = vadd.s32 208, %v527_v1  ;;  %v54_v26 = vadd.s32 216, %v527_v1  ;;  %vm72_vm11 = vcmp.eq.s32.totalorder %v35_v23, %v541_v11 }
  0x21   :  { %395 = vmatpush3.bf16.msk.msra.mxu0 %vm394_vm13, %v495_v15  ;;  %429 = vmatpush3.bf16.msk.msra.mxu1 %vm394_vm13, %v495_v15  ;;  %vm400_vm4 = vmpackc.low %vm87_vm2, %vm86_vm1  ;;  %vm73_vm12 = vcmp.eq.s32.totalorder %v36_v24, %v541_v11  ;;  %v37_v27 = vadd.s32 80, %v527_v1  ;;  %v38_v28 = vadd.s32 88, %v527_v1  ;;  %v55_v29 = vadd.s32 224, %v527_v1 }
  0x22   :  { %397 = vmatprep.subr.msk.bf16.mxu0 %vm396_vm14, %v495_v15  ;;  %422 = vmatprep.subr.msk.bf16.mxu1 %vm396_vm14, %v495_v15  ;;  %vm402_vm9 = vmpackc.low %vm71_vm6, %vm70_vm5  ;;  %vm90_vm13 = vcmp.eq.s32.totalorder %v53_v25, %v541_v11  ;;  %vm91_vm14 = vcmp.eq.s32.totalorder %v54_v26, %v541_v11  ;;  %v56_v30 = vadd.s32 232, %v527_v1  ;;  %v39_v31 = vadd.s32 96, %v527_v1 }
  0x23   :  { %vm404_vm10 = vmpackc.low %vm89_vm8, %vm88_vm7  ;;  %vm74_vm1 = vcmp.eq.s32.totalorder %v37_v27, %v541_v11  ;;  %vm75_vm2 = vcmp.eq.s32.totalorder %v38_v28, %v541_v11  ;;  %v40_v32 = vadd.s32 104, %v527_v1  ;;  %v57_v33 = vadd.s32 240, %v527_v1 }
  0x24   :  { %vm406_vm15 = vmpackc.low %vm73_vm12, %vm72_vm11  ;;  %v58_v34 = vadd.s32 248, %v527_v1  ;;  %vm76_vm7 = vcmp.eq.s32.totalorder %v39_v31, %v541_v11  ;;  %v41_v35 = vadd.s32 112, %v527_v1  ;;  %v42_v36 = vadd.s32 120, %v527_v1 }
  0x25   :  { %399 = vmatpush3.bf16.msk.msra.mxu0 %vm398_vm3, %v495_v15  ;;  %430 = vmatpush3.bf16.msk.msra.mxu1 %vm398_vm3, %v495_v15  ;;  %vm408_vm0 = vmpackc.low %vm91_vm14, %vm90_vm13  ;;  %vm92_vm3 = vcmp.eq.s32.totalorder %v55_v29, %v541_v11  ;;  %vm77_vm8 = vcmp.eq.s32.totalorder %v40_v32, %v541_v11 }
  0x26   :  { %401 = vmatprep.subr.msk.bf16.mxu0 %vm400_vm4, %v495_v15  ;;  %423 = vmatprep.subr.msk.bf16.mxu1 %vm400_vm4, %v495_v15  ;;  %vm93_vm4 = vcmp.eq.s32.totalorder %v56_v30, %v541_v11  ;;  %vm410_vm5 = vmpackc.low %vm75_vm2, %vm74_vm1  ;;  %vm78_vm13 = vcmp.eq.s32.totalorder %v41_v35, %v541_v11  ;;  %vm79_vm14 = vcmp.eq.s32.totalorder %v42_v36, %v541_v11 }
  0x27   :  { %vm412_vm6 = vmpackc.low %vm93_vm4, %vm92_vm3 }
  0x28   :  { %vm414_vm11 = vmpackc.low %vm77_vm8, %vm76_vm7 }
  0x29   :  { %403 = vmatpush3.bf16.msk.msra.mxu0 %vm402_vm9, %v495_v15  ;;  %431 = vmatpush3.bf16.msk.msra.mxu1 %vm402_vm9, %v495_v15  ;;  %vm94_vm9 = vcmp.eq.s32.totalorder %v57_v33, %v541_v11 }
  0x2a   :  { %405 = vmatprep.subr.msk.bf16.mxu0 %vm404_vm10, %v495_v15  ;;  %424 = vmatprep.subr.msk.bf16.mxu1 %vm404_vm10, %v495_v15  ;;  %vm95_vm10 = vcmp.eq.s32.totalorder %v58_v34, %v541_v11 }
  0x2b   :  { %vm416_vm12 = vmpackc.low %vm95_vm10, %vm94_vm9 }
  0x2d   :  { %407 = vmatpush3.bf16.msk.msra.mxu0 %vm406_vm15, %v495_v15  ;;  %432 = vmatpush3.bf16.msk.msra.mxu1 %vm406_vm15, %v495_v15  ;;  %vm418_vm15 = vmpackc.low %vm79_vm14, %vm78_vm13 }
  0x2e   :  { %409 = vmatprep.subr.msk.bf16.mxu0 %vm408_vm0, %v495_v15  ;;  %425 = vmatprep.subr.msk.bf16.mxu1 %vm408_vm0, %v495_v15  ;;  %vm253_vm0 = vcmask 523264  }
  0x2f   :  { %254 = vst.msk [vmem:[#allocation5] sm:$0xff] %vm253_vm0, %v496_v43  ;;  %255 = vst.msk [vmem:[#allocation5 + $0x20] sm:$0xff] %vm253_vm0, %v496_v43 }
  0x30   :  { %256 = vst.msk [vmem:[#allocation5 + $0x18] sm:$0xff] %vm253_vm0, %v496_v43  ;;  %257 = vst.msk [vmem:[#allocation5 + $0x38] sm:$0xff] %vm253_vm0, %v496_v43 }
  0x31   :  { %411 = vmatpush3.bf16.msk.msra.mxu0 %vm410_vm5, %v495_v15  ;;  %433 = vmatpush3.bf16.msk.msra.mxu1 %vm410_vm5, %v495_v15 }
  0x32   :  { %413 = vmatprep.subr.msk.bf16.mxu0 %vm412_vm6, %v495_v15  ;;  %426 = vmatprep.subr.msk.bf16.mxu1 %vm412_vm6, %v495_v15 }
  0x35   :  { %415 = vmatpush3.bf16.msk.msra.mxu0 %vm414_vm11, %v495_v15  ;;  %434 = vmatpush3.bf16.msk.msra.mxu1 %vm414_vm11, %v495_v15 }
  0x36   :  { %417 = vmatprep.subr.msk.bf16.mxu0 %vm416_vm12, %v495_v15  ;;  %427 = vmatprep.subr.msk.bf16.mxu1 %vm416_vm12, %v495_v15 }
  0x39   :  { %419 = vmatpush3.bf16.msk.msra.mxu0 %vm418_vm15, %v495_v15  ;;  %435 = vmatpush3.bf16.msk.msra.mxu1 %vm418_vm15, %v495_v15 }
  0x3c   :  { %233 = vmatmul.mubr.f32.vlgmr.msra.gmra.mrb[0].mxu0 %v160_v37  ;;  %243 = vmatmul.mubr.f32.vlgmr.msra.gmra.mrb[0].mxu1 %v164_v38 }
  0x3d   :  { %237 = vmatprep.mubr.f32.mxu0 %v163_v39  ;;  %247 = vmatprep.mubr.f32.mxu1 %v167_v40 }
  0x40   :  { %238 = vmatmul.mubr.f32.gmra.mrb[2].mxu0 %v162_v41  ;;  %248 = vmatmul.mubr.f32.gmra.mrb[2].mxu1 %v166_v42 }
 0x10f   :  { %v376_v44 = vpop.f32.mrb[0].mxu0  ;;  %v382_v45 = vpop.f32.mrb[0].mxu1 }
 0x110   :  { %v377_v46 = vpop.f32.mrb[1].mxu0  ;;  %v383_v47 = vpop.f32.mrb[1].mxu1 }
 0x111   :  { %v378_v48 = vadd.f32 %v377_v46, %v376_v44  ;;  %v384_v49 = vadd.f32 %v383_v47, %v382_v45 }
 0x113   :  { %258 = vst.msk [vmem:[#allocation5 + $0x8] sm:$0xff] %vm253_vm0, %v378_v48  ;;  %260 = vst.msk [vmem:[#allocation5 + $0x28] sm:$0xff] %vm253_vm0, %v384_v49  ;;  %v379_v50 = vpop.f32.mrb[2].mxu0  ;;  %v385_v51 = vpop.f32.mrb[2].mxu1 }
 0x114   :  { %v380_v52 = vpop.f32.mrb[3].mxu0  ;;  %v386_v53 = vpop.f32.mrb[3].mxu1 }
 0x115   :  { %v381_v54 = vadd.f32 %v380_v52, %v379_v50  ;;  %v387_v55 = vadd.f32 %v386_v53, %v385_v51 }
 0x117   :  { %259 = vst.msk [vmem:[#allocation5 + $0x10] sm:$0xff] %vm253_vm0, %v381_v54  ;;  %261 = vst.msk [vmem:[#allocation5 + $0x30] sm:$0xff] %vm253_vm0, %v387_v55 }
 0x118   :  { %477 = shalt.err (!%p474_p12)
}
 0x119   :  { %s478_s28 = scalar_lea.hbm %s660_s2, 1024 }
 0x11a   :  { %p479_p13 = scmp.ne.s32.totalorder %s660_s2, %s478_s28  ;;  %p482_p0 = scmp.lt.u32.totalorder %s478_s28, %s660_s2 }
 0x11c   :  { %p484_p1 = pnand %p482_p0, %p479_p13 }
 0x11e   :  { %487 = shalt.err (!%p484_p1)
}
 0x11f   :  { %s498_s5 = smov 128   ;;  %s499_s6 = smov 8  }
 0x120   :  { %273 = dma.vmem_to_hbm [thread:$0]  %s268_s24, 1024, %s660_s2, [#allocation4], %s498_s5, %s498_s5, %s499_s6  }
 0x121   :  { %490 = dma.done.wait [#allocation4], 1024  }
 0x122   :  { %491 = vsyncadd [#allocation4], 4294966272 }
 0x123   :  { %277 = vsyncpa [#allocation3], 1 }
 0x124   :  { %278 = vsyncpa [#allocation4], 1 }

</bundles_post_ra>
